<compile_context>
chip_gen: v6e
topology: v6e:2x2x1
jax: 0.10.0
libtpu: 0.0.40
codegen_flags: <defaults>
</compile_context>

<pallas_src>
import functools

import jax
import jax.numpy as jnp
from jax import lax
from jax.experimental import pallas as pl
from jax.experimental.pallas import tpu as pltpu


def _round_up(x, m):
    return (x + m - 1) // m * m


def _dense_kernel(*refs, hooks, has_bias, single_k, compute_dtype):
    if has_bias:
        if single_k:
            x_ref, w_ref, b_ref, o_ref = refs
            acc_ref = None
        else:
            x_ref, w_ref, b_ref, o_ref, acc_ref = refs
    else:
        if single_k:
            x_ref, w_ref, o_ref = refs
            acc_ref = None
        else:
            x_ref, w_ref, o_ref, acc_ref = refs
        b_ref = None

    x = x_ref[...]
    w = w_ref[...]
    if compute_dtype is not None:
        x = x.astype(compute_dtype)
        w = w.astype(compute_dtype)

    # x tile: (tm, tk); w tile in PyTorch (out_dim, in_dim) layout: (tn, tk).
    # Contract dim 1 of each -> (tm, tn); no weight transpose anywhere.
    prod = lax.dot_general(
        x, w,
        dimension_numbers=(((1,), (1,)), ((), ())),
        preferred_element_type=jnp.float32,
    )

    def _epilogue(y):
        if b_ref is not None:
            y = y + b_ref[...]            # broadcast bias over rows
        for fn in hooks:                  # reduce(call, hook, ft) == sequential apply
            y = fn(y)
        return y.astype(o_ref.dtype)

    if single_k:
        o_ref[...] = _epilogue(prod)
    else:
        k = pl.program_id(2)

        @pl.when(k == 0)
        def _():
            acc_ref[...] = prod           # no zero-fill + add on the first step

        @pl.when(k > 0)
        def _():
            acc_ref[...] += prod

        @pl.when(k == pl.num_programs(2) - 1)
        def _():
            o_ref[...] = _epilogue(acc_ref[...])


def _weight_block_spec(tn_e, tk_e, buffer_count):
    index_map = lambda i, j, k: (j, k)
    if buffer_count is not None and buffer_count != 2:
        try:
            return pl.BlockSpec((tn_e, tk_e), index_map,
                                pipeline_mode=pl.Buffered(buffer_count))
        except Exception:
            pass  # older/newer API without pipeline_mode -> default buffering
    return pl.BlockSpec((tn_e, tk_e), index_map)


class DensePallas:
    """Holds tile-aligned (padded, optionally bf16-cast) parameters so the
    per-call forward pass never re-pads / re-casts the weight in HBM."""

    def __init__(self, weight, bias=None, hooks=(), *,
                 tm=256, tn=512, tk=512, out_dtype=None, compute_dtype=None):
        N, K = weight.shape
        self.N, self.K = N, K
        self.hooks = tuple(hooks)
        self.tm = tm
        self.out_dtype = out_dtype
        self.compute_dtype = compute_dtype

        # Lane-dense caps; padded dims are multiples of the caps.
        self.tn_cap = min(tn, _round_up(N, 128))
        self.tk_cap = min(tk, _round_up(K, 128))
        self.Np = _round_up(N, self.tn_cap)
        self.Kp = _round_up(K, self.tk_cap)

        wp = weight
        if compute_dtype is not None and wp.dtype != compute_dtype:
            wp = wp.astype(compute_dtype)          # one-time cast (smaller HBM stream)
        if (self.Np, self.Kp) != (N, K):
            wp = jnp.pad(wp, ((0, self.Np - N), (0, self.Kp - K)))   # one-time pad
        self.wp = wp

        if bias is not None:
            bp = bias.astype(jnp.float32).reshape(1, N)
            if self.Np != N:
                bp = jnp.pad(bp, ((0, 0), (0, self.Np - N)))
            self.bp = bp
        else:
            self.bp = None

    def __call__(self, x):
        M, K = x.shape
        assert K == self.K, "x last dim must equal input_dim"
        out_dtype = self.out_dtype if self.out_dtype is not None else x.dtype

        sublane = 16 if jnp.dtype(x.dtype).itemsize == 2 else 8
        tm_e = min(self.tm, _round_up(M, sublane))
        Mp = _round_up(M, tm_e)
        Kp, Np = self.Kp, self.Np

        xp = x
        if Mp != M or Kp != K:
            xp = jnp.pad(x, ((0, Mp - M), (0, Kp - K)))   # activations only

        m_grid = Mp // tm_e
        tn_e = self.tn_cap
        n_grid = Np // tn_e
        # Keep >=2 N-tiles when M also has 1 tile so v7x's 2 TensorCores both work.
        if m_grid == 1 and n_grid == 1 and tn_e >= 256 and tn_e % 256 == 0:
            tn_e //= 2
            n_grid = Np // tn_e
        tk_e = self.tk_cap
        k_grid = Kp // tk_e
        single_k = (k_grid == 1)

        # Small-M regime is weight-streaming bound: deepen buffering on the
        # dominant (weight) stream.
        wbuf = 3 if (m_grid == 1 and n_grid * k_grid >= 3) else 2

        has_bias = self.bp is not None
        hooks = self.hooks
        compute_dtype = self.compute_dtype

        def run(wbuf_count):
            in_specs = [
                pl.BlockSpec((tm_e, tk_e), lambda i, j, k: (i, k)),   # x
                _weight_block_spec(tn_e, tk_e, wbuf_count),           # weight (N, K)
            ]
            inputs = [xp, self.wp]
            if has_bias:
                in_specs.append(pl.BlockSpec((1, tn_e), lambda i, j, k: (0, j)))
                inputs.append(self.bp)

            scratch = [] if single_k else [pltpu.VMEM((tm_e, tn_e), jnp.float32)]

            x_b = jnp.dtype(xp.dtype).itemsize
            w_b = jnp.dtype(self.wp.dtype).itemsize
            o_b = jnp.dtype(out_dtype).itemsize
            footprint = (2 * tm_e * tk_e * x_b
                         + wbuf_count * tn_e * tk_e * w_b
                         + 2 * tm_e * tn_e * o_b
                         + (0 if single_k else tm_e * tn_e * 4)
                         + (2 * tn_e * 4 if has_bias else 0))
            # Raise the scoped VMEM limit only as much as the tiles need; stays
            # well under v7x's 64 MiB per-TC physical VMEM.
            vmem_limit = min(max(32 << 20, int(footprint * 1.5) + (4 << 20)), 96 << 20)

            kernel = functools.partial(
                _dense_kernel, hooks=hooks, has_bias=has_bias,
                single_k=single_k, compute_dtype=compute_dtype)

            cost = pl.CostEstimate(
                flops=2 * Mp * Np * Kp,
                transcendentals=Mp * Np * len(hooks),
                bytes_accessed=Mp * Kp * x_b + Np * Kp * w_b + Mp * Np * o_b)

            return pl.pallas_call(
                kernel,
                out_shape=jax.ShapeDtypeStruct((Mp, Np), out_dtype),
                grid_spec=pltpu.PrefetchScalarGridSpec(
                    num_scalar_prefetch=0,
                    grid=(m_grid, n_grid, k_grid),
                    in_specs=in_specs,
                    out_specs=pl.BlockSpec((tm_e, tn_e), lambda i, j, k: (i, j)),
                    scratch_shapes=scratch,
                ),
                compiler_params=pltpu.CompilerParams(
                    dimension_semantics=("parallel", "parallel", "arbitrary"),
                    vmem_limit_bytes=vmem_limit,
                ),
                cost_estimate=cost,
            )(*inputs)

        try:
            out = run(wbuf)
        except Exception:
            if wbuf == 2:
                raise
            out = run(2)   # fall back to default double-buffering

        if Mp != M or Np != self.N:
            out = out[:M, :self.N]
        return out


def dense_forward(x, weight, bias=None, hooks=(), **kwargs):
    """Functional convenience wrapper. Prefer DensePallas for repeated calls so
    the weight pad/cast happens once instead of per forward."""
    return DensePallas(weight, bias, hooks, **kwargs)(x)


if __name__ == "__main__":
    key = jax.random.PRNGKey(0)
    kx1, kw1, kb1, kx2, kw2, kx3, kw3, kb3 = jax.random.split(key, 8)

    # The module takes `hook` in the constructor; reduce(call, hook, ft)
    # applies each function in sequence.
    hooks = (jax.nn.relu, jnp.tanh)

    def ref_dense(x, w, b, hks):
        y = x @ w.T
        if b is not None:
            y = y + b
        for fn in hks:
            y = fn(y)
        return y

    # ---- Case 1: f32 + bias; K spans 3 tiles (acc-scratch path, small-M
    # weight-streaming regime with Buffered(3) on the weight stream). --------
    M1, K1, N1 = 16, 1536, 384
    x1 = jax.random.normal(kx1, (M1, K1), jnp.float32)
    w1 = jax.random.normal(kw1, (N1, K1), jnp.float32) * 0.05
    b1 = jax.random.normal(kb1, (N1,), jnp.float32) * 0.1
    layer1 = DensePallas(w1, b1, hooks)
    y1 = jax.block_until_ready(layer1(x1))
    r1 = ref_dense(x1, w1, b1, hooks)
    assert y1.shape == (M1, N1)
    assert jnp.allclose(y1, r1, atol=1e-4, rtol=1e-4)

    # ---- Case 2: tiny bias=False layer (no bias ref compiled, no acc scratch,
    # single-K fast path; padded once to lane-dense tiles at init). -----------
    M2, K2, N2 = 8, 32, 32
    x2 = jax.random.normal(kx2, (M2, K2), jnp.float32)
    w2 = jax.random.normal(kw2, (N2, K2), jnp.float32) * 0.1
    layer2 = DensePallas(w2, None, hooks)
    y2 = jax.block_until_ready(layer2(x2))
    r2 = ref_dense(x2, w2, None, hooks)
    assert y2.shape == (M2, N2)
    assert jnp.allclose(y2, r2, atol=1e-5, rtol=1e-5)

    # ---- Case 3: bf16 compute path (f32 MXU accumulation, bf16 output,
    # N split into 2 tiles so both v7x TensorCores get work). ----------------
    M3, K3, N3 = 32, 512, 512
    x3 = jax.random.normal(kx3, (M3, K3), jnp.float32).astype(jnp.bfloat16)
    w3 = (jax.random.normal(kw3, (N3, K3), jnp.float32) * 0.05).astype(jnp.bfloat16)
    b3 = jax.random.normal(kb3, (N3,), jnp.float32) * 0.1
    layer3 = DensePallas(w3, b3, hooks,
                         compute_dtype=jnp.bfloat16, out_dtype=jnp.bfloat16)
    y3 = jax.block_until_ready(layer3(x3))
    r3 = ref_dense(x3.astype(jnp.float32), w3.astype(jnp.float32), b3, hooks)
    assert y3.shape == (M3, N3)
    assert jnp.allclose(y3.astype(jnp.float32), r3, atol=3e-2, rtol=3e-2)

    # TODO(synk): for genuinely tiny layers (e.g. 8x32x32) a plain jnp/XLA path
    # beats any standalone pallas_call; dispatch on problem size if that regime
    # matters in production.
    print("KERNEL_OK")
</pallas_src>

<mosaic_0001>
module attributes {stable_mosaic.version = 11 : i64} {
  func.func @_dense_kernel(%arg0: i32, %arg1: i32, %arg2: i32, %arg3: memref<16x512xf32, #tpu.memory_space<vmem>>, %arg4: memref<384x512xf32, #tpu.memory_space<vmem>>, %arg5: memref<1x384xf32, #tpu.memory_space<vmem>>, %arg6: memref<16x384xf32, #tpu.memory_space<vmem>>, %arg7: memref<16x384xf32, #tpu.memory_space<vmem>>) attributes {dimension_semantics = [#tpu.dimension_semantics<parallel>, #tpu.dimension_semantics<parallel>, #tpu.dimension_semantics<arbitrary>], iteration_bounds = array<i64: 1, 1, 3>, scalar_prefetch = 0 : i64, scratch_operands = 1 : i64, tpu.core_type = #tpu.core_type<tc>, window_params = [{transform_indices = @transform_0, window_bounds = array<i64: 16, 512>}, {transform_indices = @transform_1, window_bounds = array<i64: 384, 512>}, {transform_indices = @transform_2, window_bounds = array<i64: 1, 384>}, {transform_indices = @transform_3, window_bounds = array<i64: 16, 384>}]} {
    %c0 = arith.constant 0 : index
    %c0_0 = arith.constant 0 : index
    %0 = vector.load %arg3[%c0, %c0_0] : memref<16x512xf32, #tpu.memory_space<vmem>>, vector<16x512xf32>
    %c0_1 = arith.constant 0 : index
    %c0_2 = arith.constant 0 : index
    %1 = vector.load %arg4[%c0_1, %c0_2] : memref<384x512xf32, #tpu.memory_space<vmem>>, vector<384x512xf32>
    %cst = arith.constant dense<0.000000e+00> : vector<16x384xf32>
    %2 = tpu.matmul %0, %1, %cst {dimension_numbers = #tpu.dot_dimension_numbers<[1], [1], [0], [0], [0, 0, 1, 0], [], []>} : vector<16x512xf32>, vector<384x512xf32>, vector<16x384xf32> -> vector<16x384xf32>
    %c0_i32 = arith.constant 0 : i32
    %3 = arith.cmpi eq, %arg2, %c0_i32 : i32
    %4 = arith.extui %3 : i1 to i32
    %c0_i32_3 = arith.constant 0 : i32
    %5 = arith.cmpi ne, %4, %c0_i32_3 : i32
    scf.if %5 {
      %c0_7 = arith.constant 0 : index
      %c0_8 = arith.constant 0 : index
      %12 = vector.load %arg7[%c0_7, %c0_8] : memref<16x384xf32, #tpu.memory_space<vmem>>, vector<16x384xf32>
      tpu.vector_store %arg7[%c0_7, %c0_8], %2 {strides = array<i32>} : memref<16x384xf32, #tpu.memory_space<vmem>>, vector<16x384xf32>,
    } else {
    }
    %c0_i32_4 = arith.constant 0 : i32
    %6 = arith.cmpi sgt, %arg2, %c0_i32_4 : i32
    %7 = arith.extui %6 : i1 to i32
    %c0_i32_5 = arith.constant 0 : i32
    %8 = arith.cmpi ne, %7, %c0_i32_5 : i32
    scf.if %8 {
      %c0_7 = arith.constant 0 : index
      %c0_8 = arith.constant 0 : index
      %12 = vector.load %arg7[%c0_7, %c0_8] : memref<16x384xf32, #tpu.memory_space<vmem>>, vector<16x384xf32>
      %13 = arith.addf %12, %2 : vector<16x384xf32>
      %c0_9 = arith.constant 0 : index
      %c0_10 = arith.constant 0 : index
      %14 = vector.load %arg7[%c0_9, %c0_10] : memref<16x384xf32, #tpu.memory_space<vmem>>, vector<16x384xf32>
      tpu.vector_store %arg7[%c0_9, %c0_10], %13 {strides = array<i32>} : memref<16x384xf32, #tpu.memory_space<vmem>>, vector<16x384xf32>,
    } else {
    }
    %c2_i32 = arith.constant 2 : i32
    %9 = arith.cmpi eq, %arg2, %c2_i32 : i32
    %10 = arith.extui %9 : i1 to i32
    %c0_i32_6 = arith.constant 0 : i32
    %11 = arith.cmpi ne, %10, %c0_i32_6 : i32
    scf.if %11 {
      %c0_7 = arith.constant 0 : index
      %c0_8 = arith.constant 0 : index
      %12 = vector.load %arg7[%c0_7, %c0_8] : memref<16x384xf32, #tpu.memory_space<vmem>>, vector<16x384xf32>
      %c0_9 = arith.constant 0 : index
      %c0_10 = arith.constant 0 : index
      %13 = vector.load %arg5[%c0_9, %c0_10] : memref<1x384xf32, #tpu.memory_space<vmem>>, vector<1x384xf32>
      %14 = vector.broadcast %13 : vector<1x384xf32> to vector<16x384xf32>
      %15 = arith.addf %12, %14 : vector<16x384xf32>
      %cst_11 = arith.constant 0.000000e+00 : f32
      %16 = vector.broadcast %cst_11 : f32 to vector<16x384xf32>
      %17 = arith.maximumf %15, %16 : vector<16x384xf32>
      %18 = math.tanh %17 : vector<16x384xf32>
      %c0_12 = arith.constant 0 : index
      %c0_13 = arith.constant 0 : index
      %19 = vector.load %arg6[%c0_12, %c0_13] : memref<16x384xf32, #tpu.memory_space<vmem>>, vector<16x384xf32>
      tpu.vector_store %arg6[%c0_12, %c0_13], %18 {strides = array<i32>} : memref<16x384xf32, #tpu.memory_space<vmem>>, vector<16x384xf32>,
    } else {
    }
    return
  }
  func.func @transform_0(%arg0: i32, %arg1: i32, %arg2: i32) -> (i32, i32) {
    %c0_i32 = arith.constant 0 : i32
    return %arg0, %arg2 : i32, i32
  }
  func.func @transform_1(%arg0: i32, %arg1: i32, %arg2: i32) -> (i32, i32) {
    %c0_i32 = arith.constant 0 : i32
    return %arg1, %arg2 : i32, i32
  }
  func.func @transform_2(%arg0: i32, %arg1: i32, %arg2: i32) -> (i32, i32) {
    %c0_i32 = arith.constant 0 : i32
    %c0_i32_0 = arith.constant 0 : i32
    return %c0_i32, %arg1 : i32, i32
  }
  func.func @transform_3(%arg0: i32, %arg1: i32, %arg2: i32) -> (i32, i32) {
    %c0_i32 = arith.constant 0 : i32
    return %arg0, %arg1 : i32, i32
  }
}

</mosaic_0001>

<bundles_post_ra>
// kernel: tpu_custom_call.1
= control target key start
LH: loop header
LB: loop body
LE: loop exit
PB: predicated region body
PF: predicated region fallthrough
CT: control target
= control target key end

     0   :  { %s1692_s0 = inlined_call_operand.hbm [shape: f32[16,1536], index: 0, kind: input, shape index: {}]   ;;  %s1693_s1 = inlined_call_operand.hbm [shape: f32[384,1536], index: 1, kind: input, shape index: {}]   ;;  %s1694_s2 = inlined_call_operand.hbm [shape: f32[1,384], index: 2, kind: input, shape index: {}]   ;;  %s1695_s3 = inlined_call_operand.hbm [shape: f32[16,384], index: 3, kind: output, shape index: {}]  }
   0x1   :  { %1698 = sst [smem:[#allocation14_spill]] %s1692_s0 }
   0x2   :  { %1699 = sst [smem:[#allocation15_spill]] %s1694_s2 }
   0x3   :  { %8 = vsyncpa [#allocation4], 0 }
   0x4   :  { %10 = vsyncpa [#allocation4 + $0x1], 0 }
   0x5   :  { %11 = vsyncpa [#allocation7], 0 }
   0x6   :  { %13 = vsyncpa [#allocation7 + $0x1], 0 }
   0x7   :  { %14 = vsyncpa [#allocation5], 0  ;;  %s1306_s12 = smov 0   ;;  %s1308_s13 = smov 0  }
   0x8   :  { %s1310_s14 = smov 0   ;;  %s1312_s15 = smov 0  }
   0x9   :  { %s1314_s16 = smov 0   ;;  %s1316_s17 = smov 0  }
   0xa LB: > { %s1335_s18 = sadd.s32 4294967295, %s1275_s17   ;;  %s48_s19 = sadd.s32 1, %s1263_s14  ;;  %s1275_s17 = sphi %s1316_s17, %s20_s17   ;;  %s1271_s16 = sphi %s1314_s16, %s1711_s16   ;;  %s1267_s15 = sphi %s1312_s15, %s1710_s15   ;;  %s1263_s14 = sphi %s1310_s14, %s1709_s14   ;;  %s1259_s13 = sphi %s1308_s13, %s1708_s13   ;;  %s1255_s12 = sphi %s1306_s12, %s1707_s12  }
   0xb   : > { %p55_p0 = scmp.ne.s32.totalorder %s1263_s14, %s1259_s13  ;;  %p56_p1 = scmp.eq.s32.totalorder %s1275_s17, 0 }
   0xc   : > { %p61_p2 = scmp.ne.s32.totalorder %s1259_s13, %s1255_s12  ;;  %p62_p3 = scmp.eq.s32.totalorder %s1335_s18, 0 }
   0xd   : > { %p57_p4 = por %p56_p1, %p55_p0  ;;  %p990_p5 = scmp.ge.s32.totalorder %s1275_s17, 1 }
   0xe   : > { %p1346_p6 = por %p62_p3, %p61_p2  ;;  %p154_p7 = scmp.lt.s32.totalorder %s1275_s17, 4 }
   0xf   : > { %s1277_s22 = smov [#allocation8]   ;;  %p1036_p10 = scmp.lt.s32.totalorder %s1275_s17, 3 }
  0x10   : > { %s1700_s20 = scalar_select %p1346_p6, 1, 0 }
  0x11   : > { %p1351_p8 = pnand %p990_p5, %p154_p7  ;;  %s170_s23 = sshll.u32 %s1277_s22, 4  ;;  %s171_s23 = int_to_ptr.vmem [resolvable:$true] %s170_s23 }
  0x12   : > { %s1359_s24 = sand.u32 1, %s1263_s14   ;;  %p1363_p12 = pnand %p1036_p10, %p57_p4 }
  0x13   : > { %s1701_s21 = scalar_select %p1351_p8, 1, 0 }
  0x14   : > { %p1024_p9 = pneg %p1351_p8  ;;  %s1118_s26 = scalar_lea.vmem %s171_s23, 48 }
  0x15   : > { %p1119_p0 = scmp.ne.s32.totalorder %s171_s23, %s1118_s26  ;;  %s1125_s27 = scalar_lea.vmem %s171_s23, 64 }
  0x16   : > { %p1025_p11 = pnand %p1024_p9, %p62_p3  ;;  %p1126_p5 = scmp.lt.s32.totalorder %s171_s23, %s171_s23 }
  0x17   : > { %p1127_p7 = scmp.lt.s32.totalorder %s1125_s27, %s1118_s26 }
  0x18   : > { %p1109_p13 = pneg %p1025_p11 }
  0x19   : > { %p1128_p6 = por %p1127_p7, %p1126_p5 }
  0x1a   : > { %p1121_p1 = pnand %p1119_p0, %p1109_p13 }
  0x1c   : > { %p1122_p2 = pneg %p1121_p1 }
  0x1e   : > { %p1129_p8 = pnand %p1128_p6, %p1122_p2 }
  0x20   : > { %1132 = shalt.err (!%p1129_p8)
}
  0x21   : > { %s1703_s2 = sld [smem:[#allocation15_spill]]  ;;  %s32_s30 = sadd.s32 1, %s1271_s16 }
  0x22   : > { %s993_s4 = sshll.u32 %s1359_s24, 6  ;;  %p33_p4 = scmp.ge.s32.totalorder %s32_s30, 3 }
  0x23   : > { %s1008_s5 = sshll.u32 %s1271_s16, 9  ;;  %s185_s6 = scalar_lea.vmem [#allocation3], %s993_s4 }
  0x24   : > { %s195_s7 = sshll.u32 %s185_s6, 4  ;;  %s1713_s30 = smov (%p33_p4, %s32_s30), 0  ;;  %s196_s7 = int_to_ptr.vmem [resolvable:$true] %s195_s7 }
  0x25   : > { %s1704_s0 = sld [smem:[#allocation14_spill]]  ;;  %s44_s11 = ssub.s32 %s1271_s16, %s1713_s30 }
  0x26   : > { %p46_p6 = scmp.eq.s32.totalorder %s44_s11, 0  ;;  %s1010_s12 = smul.u32 1536, %s1359_s24 }
  0x27   : > { %1027 = dma.hbm_to_vmem [thread:$0]  (!%p1025_p11), %s1703_s2, 48, %s171_s23, [#allocation7]  }
  0x28   : > { %s1386_s22 = scalar_select %p46_p6, %s1263_s14, %s48_s19  }
  0x29   : > { %s182_s23 = scalar_lea.sflag [#allocation4], %s1359_s24  ;;  %p1135_p8 = pneg %p1363_p12 }
  0x2a   : > { %s1146_s26 = scalar_lea.vmem %s196_s7, 1024  ;;  %s1278_s27 = smov [#allocation3]  }
  0x2b   : > { %s194_s10 = scalar_lea.hbm %s1704_s0, %s1008_s5  ;;  %p1147_p9 = scmp.ne.s32.totalorder %s196_s7, %s1146_s26 }
  0x2c   : > { %s1151_s28 = sshll.u32 %s1278_s27, 4  ;;  %s1152_s28 = int_to_ptr.vmem [resolvable:$false] %s1151_s28 }
  0x2d   : > { %p1149_p10 = pnand %p1147_p9, %p1135_p8  ;;  %s1153_s29 = scalar_lea.vmem %s1152_s28, 2048 }
  0x2e   : > { %p1154_p13 = scmp.lt.s32.totalorder %s196_s7, %s1152_s28  ;;  %p1155_p0 = scmp.lt.s32.totalorder %s1153_s29, %s1146_s26 }
  0x2f   : > { %p1150_p11 = pneg %p1149_p10 }
  0x30   : > { %p1156_p1 = por %p1155_p0, %p1154_p13 }
  0x32   : > { %p1157_p2 = pnand %p1156_p1, %p1150_p11 }
  0x34   : > { %1160 = shalt.err (!%p1157_p2)
}
  0x35   : > { %s1279_s19 = smov 1536   ;;  %s1280_s24 = smov 512  }
  0x36   : > { %s1281_s4 = smov 32   ;;  %s218_s9 = scalar_lea.hbm %s1693_s1, %s1008_s5 }
  0x37   : > { %1031 = dma.hbm_to_vmem [thread:$0]  (!%p1363_p12), %s194_s10, 1024, %s196_s7, %s182_s23, %s1279_s19, %s1280_s24, %s1281_s4  }
  0x38   : > { %s205_s11 = sand.u32 1, %s1275_s17   ;;  %s209_s27 = scalar_lea.vmem [#allocation6], %s1010_s12 }
  0x39   : > { %s219_s26 = sshll.u32 %s209_s27, 4  ;;  %s206_s28 = scalar_lea.sflag [#allocation7], %s205_s11  ;;  %s220_s26 = int_to_ptr.vmem [resolvable:$true] %s219_s26 }
  0x3a   : > { %s1174_s29 = scalar_lea.vmem %s220_s26, 24576  ;;  %s1282_s0 = smov [#allocation6]  }
  0x3b   : > { %p1175_p5 = scmp.ne.s32.totalorder %s220_s26, %s1174_s29  ;;  %s1179_s2 = sshll.u32 %s1282_s0, 4  ;;  %s1180_s2 = int_to_ptr.vmem [resolvable:$false] %s1179_s2 }
  0x3c   : > { %s1181_s7 = scalar_lea.vmem %s1180_s2, 49152  ;;  %p1182_p6 = scmp.lt.s32.totalorder %s220_s26, %s1180_s2 }
  0x3d   : > { %p1177_p7 = pnand %p1175_p5, %p1135_p8  ;;  %p1183_p9 = scmp.lt.s32.totalorder %s1181_s7, %s1174_s29 }
  0x3f   : > { %p1178_p4 = pneg %p1177_p7  ;;  %p1184_p10 = por %p1183_p9, %p1182_p6 }
  0x41   : > { %p1185_p11 = pnand %p1184_p10, %p1178_p4 }
  0x43   : > { %1188 = shalt.err (!%p1185_p11)
}
  0x44   : > { %1034 = dma.hbm_to_vmem [thread:$0]  (!%p1363_p12), %s218_s9, 24576, %s220_s26, %s206_s28, %s1279_s19, %s1280_s24, %s1281_s4  }
  0x45   : > { %p1705_p13 = scmp.ne.s32.totalorder %s1701_s21, 0 }
  0x46   : > { %s233_s5 = sand.u32 (!%p1705_p13), 1, %s1259_s13   ;;  %p1706_p8 = scmp.ne.s32.totalorder (!%p1705_p13), %s1700_s20, 0 }
  0x47   : > { %231 = sbr.rel (%p1705_p13) target bundleno = 546 (0x222), region = 32  ;;  %s999_s10 = sshll.u32 (!%p1705_p13), %s233_s5, 6 }
  0x48   : > { %s234_s12 = scalar_lea.sflag (!%p1705_p13), [#allocation4], %s233_s5  ;;  %s1410_s23 = scalar_lea.vmem (!%p1705_p13), [#allocation3], %s999_s10 }
  0x4c   : > { %1238 = dma.done.wait (%p1706_p8), %s234_s12, 1024  }
  0x4d   : > { %1240 = vsyncadd (%p1706_p8), %s234_s12, 4294966272  ;;  %s242_s0 = sand.u32 1, %s1335_s18   ;;  %s1011_s2 = smul.u32 1536, %s233_s5 }
  0x4e   : > { %s243_s25 = scalar_lea.sflag [#allocation7], %s242_s0 }
  0x4f   : > { %s1417_s19 = scalar_lea.vmem [#allocation6], %s1011_s2 }
  0x50   : > { %1242 = dma.done.wait (%p1706_p8), %s243_s25, 24576  }
  0x51   : > { %1244 = vsyncadd (%p1706_p8), %s243_s25, 4294942720 }
  0x52   : > { %1246 = dma.done.wait (%p62_p3), [#allocation7], 48  }
  0x53   : > { %1248 = vsyncadd (%p62_p3), [#allocation7], 4294967248  ;;  %v349_v0 = vld [vmem:[%s1417_s19 + $0x1e8] sm:$0xff]  ;;  %v351_v1 = vld [vmem:[%s1417_s19 + $0x1f8] sm:$0xff]  ;;  %p1001_p3 = scmp.ne.s32.totalorder %s1267_s15, 0 }
  0x54   : > { %v348_v2 = vld [vmem:[%s1417_s19 + $0x1e0] sm:$0xff]  ;;  %480 = vmatprep.subr.mxu0 %v349_v0  ;;  %557 = vmatprep.subr.mxu1 %v351_v1  ;;  %v350_v3 = vld [vmem:[%s1417_s19 + $0x1f0] sm:$0xff]  ;;  %v345_v4 = vld [vmem:[%s1417_s19 + $0x1c8] sm:$0xff] }
  0x55   : > { %v347_v5 = vld [vmem:[%s1417_s19 + $0x1d8] sm:$0xff]  ;;  %481 = vmatpush1.xpose.msra.mxu0 %v348_v2  ;;  %558 = vmatpush1.xpose.msra.mxu1 %v350_v3  ;;  %v344_v6 = vld [vmem:[%s1417_s19 + $0x1c0] sm:$0xff]  ;;  %v346_v7 = vld [vmem:[%s1417_s19 + $0x1d0] sm:$0xff] }
  0x56   : > { %482 = vmatprep.subr.mxu0 %v345_v4  ;;  %559 = vmatprep.subr.mxu1 %v347_v5  ;;  %v341_v8 = vld [vmem:[%s1417_s19 + $0x1a8] sm:$0xff]  ;;  %v343_v9 = vld [vmem:[%s1417_s19 + $0x1b8] sm:$0xff]  ;;  %v340_v10 = vld [vmem:[%s1417_s19 + $0x1a0] sm:$0xff] }
  0x57   : > { %v342_v11 = vld [vmem:[%s1417_s19 + $0x1b0] sm:$0xff]  ;;  %v337_v12 = vld [vmem:[%s1417_s19 + $0x188] sm:$0xff]  ;;  %v339_v13 = vld [vmem:[%s1417_s19 + $0x198] sm:$0xff] }
  0x58   : > { %v336_v14 = vld [vmem:[%s1417_s19 + $0x180] sm:$0xff]  ;;  %v338_v15 = vld [vmem:[%s1417_s19 + $0x190] sm:$0xff]  ;;  %v333_v16 = vld [vmem:[%s1417_s19 + $0x168] sm:$0xff] }
  0x59   : > { %483 = vmatpush1.xpose.msra.mxu0 %v344_v6  ;;  %560 = vmatpush1.xpose.msra.mxu1 %v346_v7  ;;  %v335_v17 = vld [vmem:[%s1417_s19 + $0x178] sm:$0xff]  ;;  %v332_v18 = vld [vmem:[%s1417_s19 + $0x160] sm:$0xff]  ;;  %v334_v19 = vld [vmem:[%s1417_s19 + $0x170] sm:$0xff] }
  0x5a   : > { %484 = vmatprep.subr.mxu0 %v341_v8  ;;  %561 = vmatprep.subr.mxu1 %v343_v9  ;;  %v329_v20 = vld [vmem:[%s1417_s19 + $0x148] sm:$0xff]  ;;  %v331_v21 = vld [vmem:[%s1417_s19 + $0x158] sm:$0xff]  ;;  %v328_v22 = vld [vmem:[%s1417_s19 + $0x140] sm:$0xff] }
  0x5b   : > { %v330_v23 = vld [vmem:[%s1417_s19 + $0x150] sm:$0xff]  ;;  %v325_v24 = vld [vmem:[%s1417_s19 + $0x128] sm:$0xff]  ;;  %v327_v25 = vld [vmem:[%s1417_s19 + $0x138] sm:$0xff] }
  0x5c   : > { %v324_v26 = vld [vmem:[%s1417_s19 + $0x120] sm:$0xff]  ;;  %v326_v27 = vld [vmem:[%s1417_s19 + $0x130] sm:$0xff]  ;;  %v321_v28 = vld [vmem:[%s1417_s19 + $0x108] sm:$0xff] }
  0x5d   : > { %485 = vmatpush1.xpose.msra.mxu0 %v340_v10  ;;  %562 = vmatpush1.xpose.msra.mxu1 %v342_v11  ;;  %v323_v29 = vld [vmem:[%s1417_s19 + $0x118] sm:$0xff]  ;;  %v320_v30 = vld [vmem:[%s1417_s19 + $0x100] sm:$0xff]  ;;  %v322_v31 = vld [vmem:[%s1417_s19 + $0x110] sm:$0xff] }
  0x5e   : > { %486 = vmatprep.subr.mxu0 %v337_v12  ;;  %563 = vmatprep.subr.mxu1 %v339_v13  ;;  %v317_v32 = vld [vmem:[%s1417_s19 + $0xe8] sm:$0xff]  ;;  %v319_v33 = vld [vmem:[%s1417_s19 + $0xf8] sm:$0xff]  ;;  %v316_v34 = vld [vmem:[%s1417_s19 + $0xe0] sm:$0xff] }
  0x5f   : > { %v318_v35 = vld [vmem:[%s1417_s19 + $0xf0] sm:$0xff]  ;;  %v313_v36 = vld [vmem:[%s1417_s19 + $0xc8] sm:$0xff]  ;;  %v315_v37 = vld [vmem:[%s1417_s19 + $0xd8] sm:$0xff] }
  0x60   : > { %v312_v38 = vld [vmem:[%s1417_s19 + $0xc0] sm:$0xff]  ;;  %v314_v39 = vld [vmem:[%s1417_s19 + $0xd0] sm:$0xff]  ;;  %v309_v40 = vld [vmem:[%s1417_s19 + $0xa8] sm:$0xff] }
  0x61   : > { %487 = vmatpush1.xpose.msra.mxu0 %v336_v14  ;;  %564 = vmatpush1.xpose.msra.mxu1 %v338_v15  ;;  %v311_v41 = vld [vmem:[%s1417_s19 + $0xb8] sm:$0xff]  ;;  %v308_v42 = vld [vmem:[%s1417_s19 + $0xa0] sm:$0xff]  ;;  %v310_v43 = vld [vmem:[%s1417_s19 + $0xb0] sm:$0xff] }
  0x62   : > { %488 = vmatprep.subr.mxu0 %v333_v16  ;;  %565 = vmatprep.subr.mxu1 %v335_v17  ;;  %v305_v44 = vld [vmem:[%s1417_s19 + $0x88] sm:$0xff]  ;;  %v307_v45 = vld [vmem:[%s1417_s19 + $0x98] sm:$0xff]  ;;  %v304_v47 = vld [vmem:[%s1417_s19 + $0x80] sm:$0xff] }
  0x63   : > { %v1474_v46 = vld [vmem:[%s1410_s23 + $0x8] sm:$0xff]  ;;  %v306_v48 = vld [vmem:[%s1417_s19 + $0x90] sm:$0xff]  ;;  %v1479_v49 = vld [vmem:[%s1410_s23 + $0x18] sm:$0xff] }
  0x64   : > { %v301_v50 = vld [vmem:[%s1417_s19 + $0x68] sm:$0xff]  ;;  %v303_v51 = vld [vmem:[%s1417_s19 + $0x78] sm:$0xff]  ;;  %544 = vmatprep.mubr.f32.mxu0 %v1474_v46  ;;  %621 = vmatprep.mubr.f32.mxu1 %v1479_v49  ;;  %v300_v52 = vld [vmem:[%s1417_s19 + $0x60] sm:$0xff] }
  0x65   : > { %489 = vmatpush1.xpose.msra.mxu0 %v332_v18  ;;  %566 = vmatpush1.xpose.msra.mxu1 %v334_v19  ;;  %v302_v53 = vld [vmem:[%s1417_s19 + $0x70] sm:$0xff]  ;;  %v297_v54 = vld [vmem:[%s1417_s19 + $0x48] sm:$0xff]  ;;  %v299_v55 = vld [vmem:[%s1417_s19 + $0x58] sm:$0xff] }
  0x66   : > { %490 = vmatprep.subr.mxu0 %v329_v20  ;;  %567 = vmatprep.subr.mxu1 %v331_v21  ;;  %v296_v56 = vld [vmem:[%s1417_s19 + $0x40] sm:$0xff]  ;;  %v298_v57 = vld [vmem:[%s1417_s19 + $0x50] sm:$0xff]  ;;  %v293_v58 = vld [vmem:[%s1417_s19 + $0x28] sm:$0xff] }
  0x67   : > { %v295_v59 = vld [vmem:[%s1417_s19 + $0x38] sm:$0xff]  ;;  %v292_v60 = vld [vmem:[%s1417_s19 + $0x20] sm:$0xff]  ;;  %v294_v61 = vld [vmem:[%s1417_s19 + $0x30] sm:$0xff] }
  0x68   : > { %v289_v62 = vld [vmem:[%s1417_s19 + $0x8] sm:$0xff]  ;;  %v291_v63 = vld [vmem:[%s1417_s19 + $0x18] sm:$0xff]  ;;  %v288_v0 = vld [vmem:[%s1417_s19] sm:$0xff] }
  0x69   : > { %491 = vmatpush1.xpose.msra.mxu0 %v328_v22  ;;  %568 = vmatpush1.xpose.msra.mxu1 %v330_v23  ;;  %v290_v1 = vld [vmem:[%s1417_s19 + $0x10] sm:$0xff]  ;;  %v413_v2 = vld [vmem:[%s1417_s19 + $0x3e8] sm:$0xff]  ;;  %v415_v3 = vld [vmem:[%s1417_s19 + $0x3f8] sm:$0xff] }
  0x6a   : > { %492 = vmatprep.subr.mxu0 %v325_v24  ;;  %569 = vmatprep.subr.mxu1 %v327_v25  ;;  %v412_v4 = vld [vmem:[%s1417_s19 + $0x3e0] sm:$0xff]  ;;  %v414_v5 = vld [vmem:[%s1417_s19 + $0x3f0] sm:$0xff]  ;;  %v409_v6 = vld [vmem:[%s1417_s19 + $0x3c8] sm:$0xff] }
  0x6b   : > { %v411_v7 = vld [vmem:[%s1417_s19 + $0x3d8] sm:$0xff]  ;;  %v408_v8 = vld [vmem:[%s1417_s19 + $0x3c0] sm:$0xff]  ;;  %v410_v9 = vld [vmem:[%s1417_s19 + $0x3d0] sm:$0xff] }
  0x6c   : > { %v405_v10 = vld [vmem:[%s1417_s19 + $0x3a8] sm:$0xff]  ;;  %v407_v11 = vld [vmem:[%s1417_s19 + $0x3b8] sm:$0xff]  ;;  %v404_v12 = vld [vmem:[%s1417_s19 + $0x3a0] sm:$0xff] }
  0x6d   : > { %493 = vmatpush1.xpose.msra.mxu0 %v324_v26  ;;  %570 = vmatpush1.xpose.msra.mxu1 %v326_v27  ;;  %v406_v13 = vld [vmem:[%s1417_s19 + $0x3b0] sm:$0xff]  ;;  %v401_v14 = vld [vmem:[%s1417_s19 + $0x388] sm:$0xff]  ;;  %v403_v15 = vld [vmem:[%s1417_s19 + $0x398] sm:$0xff] }
  0x6e   : > { %494 = vmatprep.subr.mxu0 %v321_v28  ;;  %571 = vmatprep.subr.mxu1 %v323_v29  ;;  %v400_v16 = vld [vmem:[%s1417_s19 + $0x380] sm:$0xff]  ;;  %v402_v17 = vld [vmem:[%s1417_s19 + $0x390] sm:$0xff]  ;;  %v397_v18 = vld [vmem:[%s1417_s19 + $0x368] sm:$0xff] }
  0x6f   : > { %v399_v19 = vld [vmem:[%s1417_s19 + $0x378] sm:$0xff]  ;;  %v396_v20 = vld [vmem:[%s1417_s19 + $0x360] sm:$0xff]  ;;  %v398_v21 = vld [vmem:[%s1417_s19 + $0x370] sm:$0xff] }
  0x70   : > { %v393_v22 = vld [vmem:[%s1417_s19 + $0x348] sm:$0xff]  ;;  %v395_v23 = vld [vmem:[%s1417_s19 + $0x358] sm:$0xff]  ;;  %v392_v24 = vld [vmem:[%s1417_s19 + $0x340] sm:$0xff] }
  0x71   : > { %495 = vmatpush1.xpose.msra.mxu0 %v320_v30  ;;  %572 = vmatpush1.xpose.msra.mxu1 %v322_v31  ;;  %v394_v25 = vld [vmem:[%s1417_s19 + $0x350] sm:$0xff]  ;;  %v389_v26 = vld [vmem:[%s1417_s19 + $0x328] sm:$0xff]  ;;  %v391_v27 = vld [vmem:[%s1417_s19 + $0x338] sm:$0xff] }
  0x72   : > { %496 = vmatprep.subr.mxu0 %v317_v32  ;;  %573 = vmatprep.subr.mxu1 %v319_v33  ;;  %v388_v28 = vld [vmem:[%s1417_s19 + $0x320] sm:$0xff]  ;;  %v390_v29 = vld [vmem:[%s1417_s19 + $0x330] sm:$0xff]  ;;  %v385_v30 = vld [vmem:[%s1417_s19 + $0x308] sm:$0xff] }
  0x73   : > { %v387_v31 = vld [vmem:[%s1417_s19 + $0x318] sm:$0xff]  ;;  %v384_v32 = vld [vmem:[%s1417_s19 + $0x300] sm:$0xff]  ;;  %v386_v33 = vld [vmem:[%s1417_s19 + $0x310] sm:$0xff] }
  0x75   : > { %497 = vmatpush1.xpose.msra.mxu0 %v316_v34  ;;  %574 = vmatpush1.xpose.msra.mxu1 %v318_v35  ;;  %v381_v34 = vld [vmem:[%s1417_s19 + $0x2e8] sm:$0xff]  ;;  %v383_v35 = vld [vmem:[%s1417_s19 + $0x2f8] sm:$0xff] }
  0x76   : > { %498 = vmatprep.subr.mxu0 %v313_v36  ;;  %575 = vmatprep.subr.mxu1 %v315_v37  ;;  %v380_v36 = vld [vmem:[%s1417_s19 + $0x2e0] sm:$0xff]  ;;  %v382_v37 = vld [vmem:[%s1417_s19 + $0x2f0] sm:$0xff] }
  0x79   : > { %499 = vmatpush1.xpose.msra.mxu0 %v312_v38  ;;  %576 = vmatpush1.xpose.msra.mxu1 %v314_v39  ;;  %v377_v38 = vld [vmem:[%s1417_s19 + $0x2c8] sm:$0xff]  ;;  %v379_v39 = vld [vmem:[%s1417_s19 + $0x2d8] sm:$0xff] }
  0x7a   : > { %500 = vmatprep.subr.mxu0 %v309_v40  ;;  %577 = vmatprep.subr.mxu1 %v311_v41  ;;  %v376_v40 = vld [vmem:[%s1417_s19 + $0x2c0] sm:$0xff]  ;;  %v378_v41 = vld [vmem:[%s1417_s19 + $0x2d0] sm:$0xff] }
  0x7d   : > { %501 = vmatpush1.xpose.msra.mxu0 %v308_v42  ;;  %578 = vmatpush1.xpose.msra.mxu1 %v310_v43  ;;  %v373_v42 = vld [vmem:[%s1417_s19 + $0x2a8] sm:$0xff]  ;;  %v375_v43 = vld [vmem:[%s1417_s19 + $0x2b8] sm:$0xff] }
  0x7e   : > { %502 = vmatprep.subr.mxu0 %v305_v44  ;;  %579 = vmatprep.subr.mxu1 %v307_v45  ;;  %v372_v44 = vld [vmem:[%s1417_s19 + $0x2a0] sm:$0xff]  ;;  %v374_v45 = vld [vmem:[%s1417_s19 + $0x2b0] sm:$0xff] }
  0x81   : > { %503 = vmatpush1.xpose.msra.mxu0 %v304_v47  ;;  %580 = vmatpush1.xpose.msra.mxu1 %v306_v48  ;;  %v369_v47 = vld [vmem:[%s1417_s19 + $0x288] sm:$0xff]  ;;  %v371_v48 = vld [vmem:[%s1417_s19 + $0x298] sm:$0xff] }
  0x82   : > { %504 = vmatprep.subr.mxu0 %v301_v50  ;;  %581 = vmatprep.subr.mxu1 %v303_v51  ;;  %v368_v50 = vld [vmem:[%s1417_s19 + $0x280] sm:$0xff]  ;;  %v370_v51 = vld [vmem:[%s1417_s19 + $0x290] sm:$0xff] }
  0x85   : > { %505 = vmatpush1.xpose.msra.mxu0 %v300_v52  ;;  %582 = vmatpush1.xpose.msra.mxu1 %v302_v53  ;;  %v365_v52 = vld [vmem:[%s1417_s19 + $0x268] sm:$0xff]  ;;  %v367_v53 = vld [vmem:[%s1417_s19 + $0x278] sm:$0xff] }
  0x86   : > { %506 = vmatprep.subr.mxu0 %v297_v54  ;;  %583 = vmatprep.subr.mxu1 %v299_v55  ;;  %v364_v54 = vld [vmem:[%s1417_s19 + $0x260] sm:$0xff]  ;;  %v366_v55 = vld [vmem:[%s1417_s19 + $0x270] sm:$0xff] }
  0x89   : > { %507 = vmatpush1.xpose.msra.mxu0 %v296_v56  ;;  %584 = vmatpush1.xpose.msra.mxu1 %v298_v57  ;;  %v361_v56 = vld [vmem:[%s1417_s19 + $0x248] sm:$0xff]  ;;  %v363_v57 = vld [vmem:[%s1417_s19 + $0x258] sm:$0xff] }
  0x8a   : > { %508 = vmatprep.subr.mxu0 %v293_v58  ;;  %585 = vmatprep.subr.mxu1 %v295_v59  ;;  %v360_v58 = vld [vmem:[%s1417_s19 + $0x240] sm:$0xff]  ;;  %v362_v59 = vld [vmem:[%s1417_s19 + $0x250] sm:$0xff] }
  0x8d   : > { %509 = vmatpush1.xpose.msra.mxu0 %v292_v60  ;;  %586 = vmatpush1.xpose.msra.mxu1 %v294_v61  ;;  %v357_v60 = vld [vmem:[%s1417_s19 + $0x228] sm:$0xff]  ;;  %v359_v61 = vld [vmem:[%s1417_s19 + $0x238] sm:$0xff] }
  0x8e   : > { %510 = vmatprep.subr.mxu0 %v289_v62  ;;  %587 = vmatprep.subr.mxu1 %v291_v63  ;;  %v356_v62 = vld [vmem:[%s1417_s19 + $0x220] sm:$0xff]  ;;  %v358_v63 = vld [vmem:[%s1417_s19 + $0x230] sm:$0xff] }
  0x91   : > { %511 = vmatpush1.xpose.msra.mxu0 %v288_v0  ;;  %588 = vmatpush1.xpose.msra.mxu1 %v290_v1  ;;  %v353_v0 = vld [vmem:[%s1417_s19 + $0x208] sm:$0xff]  ;;  %v355_v1 = vld [vmem:[%s1417_s19 + $0x218] sm:$0xff] }
  0x92   : > { %512 = vmatprep.subr.mxu0 %v413_v2  ;;  %589 = vmatprep.subr.mxu1 %v415_v3  ;;  %v352_v2 = vld [vmem:[%s1417_s19 + $0x200] sm:$0xff]  ;;  %v354_v3 = vld [vmem:[%s1417_s19 + $0x210] sm:$0xff] }
  0x95   : > { %513 = vmatpush2.xpose.msra.mxu0 %v412_v4  ;;  %590 = vmatpush2.xpose.msra.mxu1 %v414_v5  ;;  %v477_v4 = vld [vmem:[%s1417_s19 + $0x5e8] sm:$0xff]  ;;  %v479_v5 = vld [vmem:[%s1417_s19 + $0x5f8] sm:$0xff] }
  0x96   : > { %514 = vmatprep.subr.mxu0 %v409_v6  ;;  %591 = vmatprep.subr.mxu1 %v411_v7  ;;  %v1566_v6 = vld [vmem:[%s1410_s23] sm:$0xff]  ;;  %v1569_v7 = vld [vmem:[%s1410_s23 + $0x10] sm:$0xff] }
  0x99   : > { %515 = vmatpush2.xpose.msra.mxu0 %v408_v8  ;;  %592 = vmatpush2.xpose.msra.mxu1 %v410_v9  ;;  %v476_v8 = vld [vmem:[%s1417_s19 + $0x5e0] sm:$0xff]  ;;  %v478_v9 = vld [vmem:[%s1417_s19 + $0x5f0] sm:$0xff] }
  0x9a   : > { %516 = vmatprep.subr.mxu0 %v405_v10  ;;  %593 = vmatprep.subr.mxu1 %v407_v11  ;;  %v473_v10 = vld [vmem:[%s1417_s19 + $0x5c8] sm:$0xff]  ;;  %v475_v11 = vld [vmem:[%s1417_s19 + $0x5d8] sm:$0xff] }
  0x9d   : > { %517 = vmatpush2.xpose.msra.mxu0 %v404_v12  ;;  %594 = vmatpush2.xpose.msra.mxu1 %v406_v13  ;;  %v1578_v12 = vld [vmem:[%s1410_s23 + $0x28] sm:$0xff]  ;;  %v1581_v13 = vld [vmem:[%s1410_s23 + $0x38] sm:$0xff] }
  0x9e   : > { %518 = vmatprep.subr.mxu0 %v401_v14  ;;  %595 = vmatprep.subr.mxu1 %v403_v15  ;;  %v1584_v14 = vld [vmem:[%s1410_s23 + $0x20] sm:$0xff]  ;;  %v1587_v15 = vld [vmem:[%s1410_s23 + $0x30] sm:$0xff] }
  0xa1   : > { %519 = vmatpush2.xpose.msra.mxu0 %v400_v16  ;;  %596 = vmatpush2.xpose.msra.mxu1 %v402_v17  ;;  %v472_v16 = vld [vmem:[%s1417_s19 + $0x5c0] sm:$0xff]  ;;  %v474_v17 = vld [vmem:[%s1417_s19 + $0x5d0] sm:$0xff] }
  0xa2   : > { %520 = vmatprep.subr.mxu0 %v397_v18  ;;  %597 = vmatprep.subr.mxu1 %v399_v19  ;;  %v469_v18 = vld [vmem:[%s1417_s19 + $0x5a8] sm:$0xff]  ;;  %v471_v19 = vld [vmem:[%s1417_s19 + $0x5b8] sm:$0xff] }
  0xa5   : > { %521 = vmatpush2.xpose.msra.mxu0 %v396_v20  ;;  %598 = vmatpush2.xpose.msra.mxu1 %v398_v21  ;;  %v468_v20 = vld [vmem:[%s1417_s19 + $0x5a0] sm:$0xff]  ;;  %v470_v21 = vld [vmem:[%s1417_s19 + $0x5b0] sm:$0xff] }
  0xa6   : > { %522 = vmatprep.subr.mxu0 %v393_v22  ;;  %599 = vmatprep.subr.mxu1 %v395_v23  ;;  %v465_v22 = vld [vmem:[%s1417_s19 + $0x588] sm:$0xff]  ;;  %v467_v23 = vld [vmem:[%s1417_s19 + $0x598] sm:$0xff] }
  0xa9   : > { %523 = vmatpush2.xpose.msra.mxu0 %v392_v24  ;;  %600 = vmatpush2.xpose.msra.mxu1 %v394_v25  ;;  %v464_v24 = vld [vmem:[%s1417_s19 + $0x580] sm:$0xff]  ;;  %v466_v25 = vld [vmem:[%s1417_s19 + $0x590] sm:$0xff] }
  0xaa   : > { %524 = vmatprep.subr.mxu0 %v389_v26  ;;  %601 = vmatprep.subr.mxu1 %v391_v27  ;;  %v461_v26 = vld [vmem:[%s1417_s19 + $0x568] sm:$0xff]  ;;  %v463_v27 = vld [vmem:[%s1417_s19 + $0x578] sm:$0xff] }
  0xad   : > { %525 = vmatpush2.xpose.msra.mxu0 %v388_v28  ;;  %602 = vmatpush2.xpose.msra.mxu1 %v390_v29  ;;  %v457_v28 = vld [vmem:[%s1417_s19 + $0x548] sm:$0xff]  ;;  %v459_v29 = vld [vmem:[%s1417_s19 + $0x558] sm:$0xff] }
  0xae   : > { %526 = vmatprep.subr.mxu0 %v385_v30  ;;  %603 = vmatprep.subr.mxu1 %v387_v31  ;;  %v456_v30 = vld [vmem:[%s1417_s19 + $0x540] sm:$0xff]  ;;  %v458_v31 = vld [vmem:[%s1417_s19 + $0x550] sm:$0xff] }
  0xb1   : > { %527 = vmatpush2.xpose.msra.mxu0 %v384_v32  ;;  %604 = vmatpush2.xpose.msra.mxu1 %v386_v33  ;;  %v453_v32 = vld [vmem:[%s1417_s19 + $0x528] sm:$0xff]  ;;  %v455_v33 = vld [vmem:[%s1417_s19 + $0x538] sm:$0xff] }
  0xb2   : > { %528 = vmatprep.subr.mxu0 %v381_v34  ;;  %605 = vmatprep.subr.mxu1 %v383_v35  ;;  %v452_v34 = vld [vmem:[%s1417_s19 + $0x520] sm:$0xff]  ;;  %v454_v35 = vld [vmem:[%s1417_s19 + $0x530] sm:$0xff] }
  0xb5   : > { %529 = vmatpush2.xpose.msra.mxu0 %v380_v36  ;;  %606 = vmatpush2.xpose.msra.mxu1 %v382_v37  ;;  %v449_v36 = vld [vmem:[%s1417_s19 + $0x508] sm:$0xff]  ;;  %v451_v37 = vld [vmem:[%s1417_s19 + $0x518] sm:$0xff] }
  0xb6   : > { %530 = vmatprep.subr.mxu0 %v377_v38  ;;  %607 = vmatprep.subr.mxu1 %v379_v39  ;;  %v448_v38 = vld [vmem:[%s1417_s19 + $0x500] sm:$0xff]  ;;  %v450_v39 = vld [vmem:[%s1417_s19 + $0x510] sm:$0xff] }
  0xb9   : > { %531 = vmatpush2.xpose.msra.mxu0 %v376_v40  ;;  %608 = vmatpush2.xpose.msra.mxu1 %v378_v41  ;;  %v445_v40 = vld [vmem:[%s1417_s19 + $0x4e8] sm:$0xff]  ;;  %v447_v41 = vld [vmem:[%s1417_s19 + $0x4f8] sm:$0xff] }
  0xba   : > { %532 = vmatprep.subr.mxu0 %v373_v42  ;;  %609 = vmatprep.subr.mxu1 %v375_v43  ;;  %v444_v42 = vld [vmem:[%s1417_s19 + $0x4e0] sm:$0xff]  ;;  %v446_v43 = vld [vmem:[%s1417_s19 + $0x4f0] sm:$0xff] }
  0xbd   : > { %533 = vmatpush2.xpose.msra.mxu0 %v372_v44  ;;  %610 = vmatpush2.xpose.msra.mxu1 %v374_v45  ;;  %v441_v44 = vld [vmem:[%s1417_s19 + $0x4c8] sm:$0xff]  ;;  %v443_v45 = vld [vmem:[%s1417_s19 + $0x4d8] sm:$0xff] }
  0xbe   : > { %534 = vmatprep.subr.mxu0 %v369_v47  ;;  %611 = vmatprep.subr.mxu1 %v371_v48  ;;  %v440_v47 = vld [vmem:[%s1417_s19 + $0x4c0] sm:$0xff]  ;;  %v442_v48 = vld [vmem:[%s1417_s19 + $0x4d0] sm:$0xff] }
  0xc1   : > { %535 = vmatpush2.xpose.msra.mxu0 %v368_v50  ;;  %612 = vmatpush2.xpose.msra.mxu1 %v370_v51  ;;  %v437_v50 = vld [vmem:[%s1417_s19 + $0x4a8] sm:$0xff]  ;;  %v439_v51 = vld [vmem:[%s1417_s19 + $0x4b8] sm:$0xff] }
  0xc2   : > { %536 = vmatprep.subr.mxu0 %v365_v52  ;;  %613 = vmatprep.subr.mxu1 %v367_v53  ;;  %v436_v52 = vld [vmem:[%s1417_s19 + $0x4a0] sm:$0xff]  ;;  %v438_v53 = vld [vmem:[%s1417_s19 + $0x4b0] sm:$0xff] }
  0xc5   : > { %537 = vmatpush2.xpose.msra.mxu0 %v364_v54  ;;  %614 = vmatpush2.xpose.msra.mxu1 %v366_v55  ;;  %v433_v54 = vld [vmem:[%s1417_s19 + $0x488] sm:$0xff]  ;;  %v435_v55 = vld [vmem:[%s1417_s19 + $0x498] sm:$0xff] }
  0xc6   : > { %538 = vmatprep.subr.mxu0 %v361_v56  ;;  %615 = vmatprep.subr.mxu1 %v363_v57  ;;  %v432_v56 = vld [vmem:[%s1417_s19 + $0x480] sm:$0xff]  ;;  %v434_v57 = vld [vmem:[%s1417_s19 + $0x490] sm:$0xff] }
  0xc9   : > { %539 = vmatpush2.xpose.msra.mxu0 %v360_v58  ;;  %616 = vmatpush2.xpose.msra.mxu1 %v362_v59  ;;  %v429_v58 = vld [vmem:[%s1417_s19 + $0x468] sm:$0xff]  ;;  %v431_v59 = vld [vmem:[%s1417_s19 + $0x478] sm:$0xff] }
  0xca   : > { %540 = vmatprep.subr.mxu0 %v357_v60  ;;  %617 = vmatprep.subr.mxu1 %v359_v61  ;;  %v428_v60 = vld [vmem:[%s1417_s19 + $0x460] sm:$0xff]  ;;  %v430_v61 = vld [vmem:[%s1417_s19 + $0x470] sm:$0xff] }
  0xcd   : > { %541 = vmatpush2.xpose.msra.mxu0 %v356_v62  ;;  %618 = vmatpush2.xpose.msra.mxu1 %v358_v63  ;;  %v425_v62 = vld [vmem:[%s1417_s19 + $0x448] sm:$0xff]  ;;  %v427_v63 = vld [vmem:[%s1417_s19 + $0x458] sm:$0xff] }
  0xce   : > { %542 = vmatprep.subr.mxu0 %v353_v0  ;;  %619 = vmatprep.subr.mxu1 %v355_v1  ;;  %v424_v0 = vld [vmem:[%s1417_s19 + $0x440] sm:$0xff]  ;;  %v426_v1 = vld [vmem:[%s1417_s19 + $0x450] sm:$0xff] }
  0xd1   : > { %543 = vmatpush2.xpose.msra.mxu0 %v352_v2  ;;  %620 = vmatpush2.xpose.msra.mxu1 %v354_v3  ;;  %v421_v2 = vld [vmem:[%s1417_s19 + $0x428] sm:$0xff]  ;;  %v423_v3 = vld [vmem:[%s1417_s19 + $0x438] sm:$0xff] }
  0xd2   : > { %634 = vmatprep.subr.mxu0 %v477_v4  ;;  %709 = vmatprep.subr.mxu1 %v479_v5  ;;  %v420_v4 = vld [vmem:[%s1417_s19 + $0x420] sm:$0xff]  ;;  %v422_v5 = vld [vmem:[%s1417_s19 + $0x430] sm:$0xff] }
  0xd4   : > { %545 = vmatmul.mubr.f32.vlgmr.msra.gmra.mxu0 %v1566_v6  ;;  %622 = vmatmul.mubr.f32.vlgmr.msra.gmra.mxu1 %v1569_v7 }
  0xd5   : > { %635 = vmatpush1.xpose.msra.mxu0 %v476_v8  ;;  %710 = vmatpush1.xpose.msra.mxu1 %v478_v9  ;;  %v417_v8 = vld [vmem:[%s1417_s19 + $0x408] sm:$0xff]  ;;  %v419_v9 = vld [vmem:[%s1417_s19 + $0x418] sm:$0xff] }
  0xd6   : > { %636 = vmatprep.subr.mxu0 %v473_v10  ;;  %711 = vmatprep.subr.mxu1 %v475_v11  ;;  %v416_v10 = vld [vmem:[%s1417_s19 + $0x400] sm:$0xff]  ;;  %v418_v11 = vld [vmem:[%s1417_s19 + $0x410] sm:$0xff] }
  0xd7   : > { %550 = vmatprep.mubr.f32.mxu0 %v1578_v12  ;;  %627 = vmatprep.mubr.f32.mxu1 %v1581_v13 }
  0xd8   : > { %551 = vmatmul.mubr.f32.gmra.mxu0 %v1584_v14  ;;  %628 = vmatmul.mubr.f32.gmra.mxu1 %v1587_v15 }
  0xd9   : > { %637 = vmatpush1.xpose.msra.mxu0 %v472_v16  ;;  %712 = vmatpush1.xpose.msra.mxu1 %v474_v17 }
  0xda   : > { %638 = vmatprep.subr.mxu0 %v469_v18  ;;  %713 = vmatprep.subr.mxu1 %v471_v19 }
  0xdb   : > { %698 = vmatprep.mubr.f32.mxu0 %v1474_v46  ;;  %773 = vmatprep.mubr.f32.mxu1 %v1479_v49  ;;  %v460_v46 = vld [vmem:[%s1417_s19 + $0x560] sm:$0xff]  ;;  %v462_v49 = vld [vmem:[%s1417_s19 + $0x570] sm:$0xff] }
  0xdd   : > { %639 = vmatpush1.xpose.msra.mxu0 %v468_v20  ;;  %714 = vmatpush1.xpose.msra.mxu1 %v470_v21 }
  0xde   : > { %640 = vmatprep.subr.mxu0 %v465_v22  ;;  %715 = vmatprep.subr.mxu1 %v467_v23 }
  0xe1   : > { %641 = vmatpush1.xpose.msra.mxu0 %v464_v24  ;;  %716 = vmatpush1.xpose.msra.mxu1 %v466_v25 }
  0xe2   : > { %642 = vmatprep.subr.mxu0 %v461_v26  ;;  %717 = vmatprep.subr.mxu1 %v463_v27 }
  0xe5   : > { %643 = vmatpush1.xpose.msra.mxu0 %v460_v46  ;;  %718 = vmatpush1.xpose.msra.mxu1 %v462_v49 }
  0xe6   : > { %644 = vmatprep.subr.mxu0 %v457_v28  ;;  %719 = vmatprep.subr.mxu1 %v459_v29 }
  0xe9   : > { %645 = vmatpush1.xpose.msra.mxu0 %v456_v30  ;;  %720 = vmatpush1.xpose.msra.mxu1 %v458_v31 }
  0xea   : > { %646 = vmatprep.subr.mxu0 %v453_v32  ;;  %721 = vmatprep.subr.mxu1 %v455_v33 }
  0xed   : > { %647 = vmatpush1.xpose.msra.mxu0 %v452_v34  ;;  %722 = vmatpush1.xpose.msra.mxu1 %v454_v35 }
  0xee   : > { %648 = vmatprep.subr.mxu0 %v449_v36  ;;  %723 = vmatprep.subr.mxu1 %v451_v37 }
  0xf1   : > { %649 = vmatpush1.xpose.msra.mxu0 %v448_v38  ;;  %724 = vmatpush1.xpose.msra.mxu1 %v450_v39 }
  0xf2   : > { %650 = vmatprep.subr.mxu0 %v445_v40  ;;  %725 = vmatprep.subr.mxu1 %v447_v41 }
  0xf5   : > { %651 = vmatpush1.xpose.msra.mxu0 %v444_v42  ;;  %726 = vmatpush1.xpose.msra.mxu1 %v446_v43 }
  0xf6   : > { %652 = vmatprep.subr.mxu0 %v441_v44  ;;  %727 = vmatprep.subr.mxu1 %v443_v45 }
  0xf9   : > { %653 = vmatpush1.xpose.msra.mxu0 %v440_v47  ;;  %728 = vmatpush1.xpose.msra.mxu1 %v442_v48 }
  0xfa   : > { %654 = vmatprep.subr.mxu0 %v437_v50  ;;  %729 = vmatprep.subr.mxu1 %v439_v51 }
  0xfd   : > { %655 = vmatpush1.xpose.msra.mxu0 %v436_v52  ;;  %730 = vmatpush1.xpose.msra.mxu1 %v438_v53 }
  0xfe   : > { %656 = vmatprep.subr.mxu0 %v433_v54  ;;  %731 = vmatprep.subr.mxu1 %v435_v55 }
 0x101   : > { %657 = vmatpush1.xpose.msra.mxu0 %v432_v56  ;;  %732 = vmatpush1.xpose.msra.mxu1 %v434_v57 }
 0x102   : > { %658 = vmatprep.subr.mxu0 %v429_v58  ;;  %733 = vmatprep.subr.mxu1 %v431_v59 }
 0x105   : > { %659 = vmatpush1.xpose.msra.mxu0 %v428_v60  ;;  %734 = vmatpush1.xpose.msra.mxu1 %v430_v61 }
 0x106   : > { %660 = vmatprep.subr.mxu0 %v425_v62  ;;  %735 = vmatprep.subr.mxu1 %v427_v63 }
 0x109   : > { %661 = vmatpush1.xpose.msra.mxu0 %v424_v0  ;;  %736 = vmatpush1.xpose.msra.mxu1 %v426_v1 }
 0x10a   : > { %662 = vmatprep.subr.mxu0 %v421_v2  ;;  %737 = vmatprep.subr.mxu1 %v423_v3 }
 0x10d   : > { %663 = vmatpush1.xpose.msra.mxu0 %v420_v4  ;;  %738 = vmatpush1.xpose.msra.mxu1 %v422_v5 }
 0x10e   : > { %664 = vmatprep.subr.mxu0 %v417_v8  ;;  %739 = vmatprep.subr.mxu1 %v419_v9 }
 0x111   : > { %665 = vmatpush1.xpose.msra.mxu0 %v416_v10  ;;  %740 = vmatpush1.xpose.msra.mxu1 %v418_v11 }
 0x114   : > { %699 = vmatmul.mubr.f32.vlgmr.msra.gmra.mxu0 %v1566_v6  ;;  %774 = vmatmul.mubr.f32.vlgmr.msra.gmra.mxu1 %v1569_v7 }
 0x115   : > { %703 = vmatprep.mubr.f32.mxu0 %v1578_v12  ;;  %778 = vmatprep.mubr.f32.mxu1 %v1581_v13 }
 0x118   : > { %704 = vmatmul.mubr.f32.gmra.mxu0 %v1584_v14  ;;  %779 = vmatmul.mubr.f32.gmra.mxu1 %v1587_v15 }
 0x194   : > { %v546_v16 = vpop.f32.mrf.mxu0  ;;  %v623_v17 = vpop.f32.mrf.mxu1 }
 0x195   : > { %v624_v18 = vadd.f32 %v623_v17, %v546_v16 }
 0x196   : > { %v548_v19 = vpop.f32.mrf.mxu0  ;;  %v625_v20 = vpop.f32.mrf.mxu1 }
 0x197   : > { %v626_v21 = vadd.f32 %v625_v20, %v548_v19 }
 0x198   : > { %v552_v22 = vpop.f32.mrf.mxu0  ;;  %v629_v23 = vpop.f32.mrf.mxu1 }
 0x199   : > { %v630_v24 = vadd.f32 %v629_v23, %v552_v22 }
 0x19a   : > { %v554_v6 = vpop.f32.mrf.mxu0  ;;  %v631_v25 = vpop.f32.mrf.mxu1 }
 0x19b   : > { %v632_v7 = vadd.f32 %v631_v25, %v554_v6 }
 0x1d4   : > { %v700_v26 = vpop.f32.mrf.mxu0  ;;  %v775_v12 = vpop.f32.mrf.mxu1 }
 0x1d5   : > { %v776_v27 = vadd.f32 %v775_v12, %v700_v26 }
 0x1d6   : > { %v702_v13 = vpop.f32.mrf.mxu0  ;;  %v777_v46 = vpop.f32.mrf.mxu1  ;;  %787 = sbr.rel (%p1001_p3) target bundleno = 478 (0x1de), region = 48 }
 0x1d8   : > { %v705_v14 = vpop.f32.mrf.mxu0  ;;  %v780_v49 = vpop.f32.mrf.mxu1 }
 0x1d9   : > { %v781_v15 = vadd.f32 %v780_v49, %v705_v14 }
 0x1da   : > { %v707_v28 = vpop.f32.mrf.mxu0  ;;  %v782_v29 = vpop.f32.mrf.mxu1 }
 0x1db   : > { %788 = vst [vmem:[#allocation2 + $0x28] sm:$0xff] %v624_v18  ;;  %789 = vst [vmem:[#allocation2 + $0x10] sm:$0xff] %v626_v21 }
 0x1dc   : > { %790 = vst [vmem:[#allocation2 + $0x8] sm:$0xff] %v776_v27  ;;  %791 = vst [vmem:[#allocation2] sm:$0xff] %v630_v24 }
 0x1dd   : > { %792 = vst [vmem:[#allocation2 + $0x18] sm:$0xff] %v632_v7  ;;  %793 = vst [vmem:[#allocation2 + $0x20] sm:$0xff] %v781_v15 }
 0x1de PF: > { %p1002_p12 = scmp.le.s32.totalorder %s1267_s15, 0 }
 0x1e0   : > { %797 = sbr.rel (%p1002_p12) target bundleno = 491 (0x1eb), region = 52 }
 0x1e5   : > { %v798_v30 = vld [vmem:[#allocation2 + $0x28] sm:$0xff]  ;;  %v799_v31 = vld [vmem:[#allocation2 + $0x10] sm:$0xff]  ;;  %v801_v36 = vld [vmem:[#allocation2] sm:$0xff] }
 0x1e6   : > { %v800_v32 = vld [vmem:[#allocation2 + $0x8] sm:$0xff]  ;;  %v804_v33 = vadd.f32 %v798_v30, %v624_v18  ;;  %v805_v34 = vadd.f32 %v799_v31, %v626_v21  ;;  %v802_v37 = vld [vmem:[#allocation2 + $0x18] sm:$0xff]  ;;  %v803_v38 = vld [vmem:[#allocation2 + $0x20] sm:$0xff]  ;;  %v807_v39 = vadd.f32 %v801_v36, %v630_v24 }
 0x1e7   : > { %v806_v35 = vadd.f32 %v800_v32, %v776_v27  ;;  %v808_v40 = vadd.f32 %v802_v37, %v632_v7  ;;  %v809_v41 = vadd.f32 %v803_v38, %v781_v15 }
 0x1e8   : > { %810 = vst [vmem:[#allocation2 + $0x28] sm:$0xff] %v804_v33  ;;  %811 = vst [vmem:[#allocation2 + $0x10] sm:$0xff] %v805_v34 }
 0x1e9   : > { %812 = vst [vmem:[#allocation2 + $0x8] sm:$0xff] %v806_v35  ;;  %813 = vst [vmem:[#allocation2] sm:$0xff] %v807_v39 }
 0x1ea   : > { %814 = vst [vmem:[#allocation2 + $0x18] sm:$0xff] %v808_v40  ;;  %815 = vst [vmem:[#allocation2 + $0x20] sm:$0xff] %v809_v41 }
 0x1eb PF: > { %p1003_p0 = scmp.ne.s32.totalorder %s1267_s15, 2 }
 0x1ed   : > { %819 = sbr.rel (%p1003_p0) target bundleno = 530 (0x212), region = 56 }
 0x1f2   : > { %v828_v42 = vlaneseq  ;;  %v826_v44 = vld [vmem:[#allocation8] sm:$0x7]  ;;  %v820_v45 = vld [vmem:[#allocation2 + $0x28] sm:$0xff]  ;;  %v823_v53 = vld [vmem:[#allocation2] sm:$0xff] }
 0x1f3   : > { %v821_v51 = vld [vmem:[#allocation2 + $0x10] sm:$0xff]  ;;  %v822_v52 = vld [vmem:[#allocation2 + $0x8] sm:$0xff]  ;;  %v824_v57 = vld [vmem:[#allocation2 + $0x18] sm:$0xff] }
 0x1f4   : > { %v829_v43 = vshrl.u32 %v828_v42, 7  ;;  %v825_v58 = vld [vmem:[#allocation2 + $0x20] sm:$0xff] }
 0x1f6   : > { %v830_v47 = vsub.s32 0, %v829_v43  ;;  %v834_v48 = vsub.s32 1, %v829_v43  ;;  %v838_v50 = vsub.s32 2, %v829_v43 }
 0x1f8   : > { %v831_v54 = vrot.slane %v826_v44, %v830_v47  ;;  %v835_v55 = vrot.slane %v826_v44, %v834_v48  ;;  %v839_v56 = vrot.slane %v826_v44, %v838_v50 }
 0x1fa   : > { %v843_v59 = vadd.f32 %v831_v54, %v820_v45  ;;  %v844_v60 = vadd.f32 %v835_v55, %v821_v51  ;;  %v845_v61 = vadd.f32 %v839_v56, %v822_v52  ;;  %v846_v62 = vadd.f32 %v831_v54, %v823_v53 }
 0x1fb   : > { %v847_v63 = vadd.f32 %v835_v55, %v824_v57  ;;  %v848_v0 = vadd.f32 %v839_v56, %v825_v58 }
 0x1fc   : > { %v849_v1 = vmax.f32 %v843_v59, 0.0  ;;  %v850_v2 = vmax.f32 %v844_v60, 0.0  ;;  %v851_v3 = vmax.f32 %v845_v61, 0.0  ;;  %v852_v4 = vmax.f32 %v846_v62, 0.0 }
 0x1fd   : > { %v853_v5 = vmax.f32 %v847_v63, 0.0  ;;  %v854_v8 = vmax.f32 %v848_v0, 0.0 }
 0x1fe   : > { %1095 = vtanh.f32 %v849_v1 }
 0x1ff   : > { %1097 = vtanh.f32 %v850_v2 }
 0x200   : > { %1099 = vtanh.f32 %v851_v3 }
 0x201   : > { %1101 = vtanh.f32 %v852_v4 }
 0x202   : > { %1103 = vtanh.f32 %v853_v5 }
 0x203   : > { %1105 = vtanh.f32 %v854_v8 }
 0x20b   : > { %v1096_v9 = vpop.eup %1095 }
 0x20c   : > { %v1098_v10 = vpop.eup %1097  ;;  %861 = vst [vmem:[#allocation9] sm:$0xff] %v1096_v9 }
 0x20d   : > { %v1100_v11 = vpop.eup %1099  ;;  %862 = vst [vmem:[#allocation9 + $0x8] sm:$0xff] %v1098_v10 }
 0x20e   : > { %v1102_v16 = vpop.eup %1101  ;;  %863 = vst [vmem:[#allocation9 + $0x10] sm:$0xff] %v1100_v11 }
 0x20f   : > { %v1104_v17 = vpop.eup %1103  ;;  %864 = vst [vmem:[#allocation9 + $0x18] sm:$0xff] %v1102_v16 }
 0x210   : > { %v1106_v18 = vpop.eup %1105  ;;  %865 = vst [vmem:[#allocation9 + $0x20] sm:$0xff] %v1104_v17 }
 0x211   : > { %866 = vst [vmem:[#allocation9 + $0x28] sm:$0xff] %v1106_v18 }
 0x212 PF: > { %p1038_p1 = scmp.eq.s32.totalorder %s1335_s18, 2  ;;  %s1283_s15 = smov [#allocation9]  }
 0x213   : > { %s879_s20 = sshll.u32 %s1283_s15, 4  ;;  %s880_s20 = int_to_ptr.vmem [resolvable:$true] %s879_s20 }
 0x214   : > { %s1189_s21 = scalar_lea.vmem %s880_s20, 768  ;;  %p1196_p4 = scmp.lt.s32.totalorder %s880_s20, %s880_s20 }
 0x215   : > { %p1190_p2 = scmp.ne.s32.totalorder %s880_s20, %s1189_s21  ;;  %p1197_p6 = scmp.lt.s32.totalorder %s1189_s21, %s1189_s21 }
 0x217   : > { %p1191_p5 = pnand %p1190_p2, %p1038_p1  ;;  %p1198_p9 = por %p1197_p6, %p1196_p4 }
 0x219   : > { %p1192_p7 = pneg %p1191_p5 }
 0x21b   : > { %p1199_p10 = pnand %p1198_p9, %p1192_p7 }
 0x21d   : > { %1202 = shalt.err (!%p1199_p10)
}
 0x21e   : > { %s1284_s24 = smov 384   ;;  %s1285_s4 = smov 24  }
 0x21f   : > { %1021 = dma.vmem_to_hbm [thread:$0]  (%p1038_p1), %s880_s20, 768, %s1695_s3, [#allocation5], %s1284_s24, %s1284_s24, %s1285_s4  }
 0x220   : > { %1250 = dma.done.wait (%p1038_p1), [#allocation5], 768  }
 0x221   : > { %1252 = vsyncadd (%p1038_p1), [#allocation5], 4294966528 }
 0x222 PF: > { %s20_s17 = sadd.s32 1, %s1275_s17   ;;  %s1707_s12 = smov %s1259_s13 }
 0x223   : > { %p17_p11 = scmp.ge.s32.totalorder %s20_s17, 5   ;;  %s1708_s13 = smov %s1263_s14 }
 0x224   : > { %s1709_s14 = smov %s1386_s22  ;;  %s1710_s15 = smov %s1271_s16 }
 0x225   : > { %s1711_s16 = smov %s1713_s30  ;;  %19 = sbr.rel (!%p17_p11) target bundleno = 10 (0xa), region = 100 }
 0x22a   :  { %895 = vsyncpa [#allocation4], 1 }
 0x22b   :  { %897 = vsyncpa [#allocation4 + $0x1], 1 }
 0x22c   :  { %898 = vsyncpa [#allocation7], 1 }
 0x22d   :  { %900 = vsyncpa [#allocation7 + $0x1], 1 }
 0x22e   :  { %901 = vsyncpa [#allocation5], 1 }
 0x22f   :  { %903 = vsyncpa [#allocation5 + $0x1], 1 }

</bundles_post_ra>
